<compile_context>
chip_gen: v7x
topology: tpu7x:2x2x1
jax: 0.10.0
libtpu: 0.0.40
codegen_flags: <defaults>
</compile_context>

<pallas_src>
import functools

import jax
import jax.numpy as jnp
from jax.experimental import pallas as pl
from jax.experimental.pallas import tpu as pltpu


def _round_up(x, m):
    return ((x + m - 1) // m) * m


def _stsc_attention_kernel(x_ref, wk_ref, b_ref, w2_ref, out_ref, acc_ref, *,
                           pad, compute_dtype):
    # x_ref  : [T, BBLK, N]      native [T, B, N] batch block (no transposes)
    # wk_ref : [K, N, RP]        conv taps, wk_ref[k] = conv_w[:, :, k].T  (r zero-padded to RP)
    # b_ref  : [1, RP]           conv bias (f32, zero-padded)
    # w2_ref : [RP, N]           linear weight transposed (zero-padded rows)
    # out_ref: [T_out, BBLK, N]
    # acc_ref: [T_out, BBLK, RP] f32 conv accumulator scratch
    T, BBLK, N = x_ref.shape
    K = wk_ref.shape[0]
    RP = wk_ref.shape[2]
    T_out = out_ref.shape[0]

    # One big lhs shared by all conv taps: M = T*BBLK.  Merging the two leading
    # dims is a layout no-op when BBLK is a multiple of 8 (wrapper guarantees).
    x2d = x_ref[...].reshape(T * BBLK, N).astype(compute_dtype)

    # h[t] = bias + sum_k hk[t + k - pad]; start the accumulator at the bias.
    bias = b_ref[0].astype(jnp.float32)                               # [RP]
    acc_ref[...] = jnp.broadcast_to(bias[None, None, :], (T_out, BBLK, RP))

    # K large MXU matmuls (static unroll over taps) + shifted leading-dim adds.
    # Conv zero padding in time == skipping the out-of-range rows, so boundary
    # handling costs nothing (no clip, no masks, no wasted matmuls).
    for k in range(K):
        hk = jnp.dot(x2d, wk_ref[k].astype(compute_dtype),
                     preferred_element_type=jnp.float32)              # [T*BBLK, RP]
        hk = hk.reshape(T, BBLK, RP)
        s = k - pad
        src_lo = max(0, s)
        src_hi = min(T, T_out + s)
        n_rows = src_hi - src_lo
        if n_rows > 0:
            dst_lo = src_lo - s
            acc_ref[pl.ds(dst_lo, n_rows)] += hk[src_lo:src_hi]

    # ReLU -> one big matmul -> sigmoid(-y) == 1 - sigmoid(y) -> one dense store.
    h = jnp.maximum(acc_ref[...], 0.0)                                # [T_out, BBLK, RP]
    y = jnp.dot(h.reshape(T_out * BBLK, RP).astype(compute_dtype),
                w2_ref[...].astype(compute_dtype),
                preferred_element_type=jnp.float32)                   # [T_out*BBLK, N]
    out_ref[...] = jax.nn.sigmoid(-y).reshape(T_out, BBLK, N).astype(out_ref.dtype)


def _vmem_capacity_bytes():
    try:
        return int(pltpu.get_tpu_info().vmem_capacity_bytes)
    except Exception:
        return 64 * 1024 * 1024          # conservative: v7x has the smallest VMEM


def _choose_batch_block(B, T, T_out, N, RP, in_itemsize, c_itemsize):
    """Largest 8-aligned batch block whose per-grid-step VMEM footprint fits a
    generation-aware budget, capped so the grid keeps >= 2 (>= 4) blocks when
    the batch is large enough (v7x megacore + pipelining)."""
    vmem_cap = _vmem_capacity_bytes()
    budget = int(0.6 * vmem_cap)                     # headroom for compiler scratch
    per_b = (
        2 * T * N * in_itemsize                      # x block (double-buffered)
        + 2 * T_out * N * in_itemsize                # out block (double-buffered)
        + T * N * c_itemsize                         # x2d cast copy
        + T * RP * 4                                 # one live per-tap matmul result (f32)
        + 2 * T_out * RP * 4                         # acc scratch + relu temp (f32)
        + T_out * RP * c_itemsize                    # h cast for the 2nd matmul
        + T_out * N * 4                              # y (f32)
        + T_out * N * in_itemsize                    # sigmoid result cast
    )
    cap = max(8, (budget // per_b) // 8 * 8)
    if B >= 32:                                      # keep >= 4 grid steps
        cap = min(cap, _round_up(-(-B // 4), 8))
    elif B >= 16:                                    # keep >= 2 grid steps
        cap = min(cap, _round_up(-(-B // 2), 8))
    # Never let the block exceed the array dim (block == full dim is always legal).
    bblk = B if cap >= B else cap
    return bblk, per_b, vmem_cap


def stsc_attention(x_seq, conv_w, conv_b, lin_w, time_rf, *,
                   compute_dtype=jnp.bfloat16, batch_block=None):
    """x_seq: [T, B, N]; conv_w: [r, N, K]; conv_b: [r]; lin_w: [N, r]."""
    T, B, N = x_seq.shape
    r = conv_w.shape[0]
    K = conv_w.shape[2]
    assert K == time_rf
    pad = (time_rf - 1) // 2
    T_out = T + 2 * pad - K + 1
    assert T_out >= 1

    # Lane-dense intermediate width (MXU-time neutral, exact math: pads are 0).
    RP = _round_up(r, 128)

    # Tiny one-time weight repacks (activations stay in their native layout and
    # are never copied outside the kernel).
    wk = jnp.transpose(conv_w, (2, 1, 0))                             # [K, N, r]
    wk = jnp.pad(wk, ((0, 0), (0, 0), (0, RP - r))).astype(compute_dtype)
    w2 = jnp.pad(jnp.transpose(lin_w), ((0, RP - r), (0, 0))).astype(compute_dtype)  # [RP, N]
    bias = jnp.pad(conv_b, (0, RP - r)).reshape(1, RP).astype(jnp.float32)

    in_itemsize = jnp.dtype(x_seq.dtype).itemsize
    c_itemsize = jnp.dtype(compute_dtype).itemsize
    auto_bblk, per_b, vmem_cap = _choose_batch_block(
        B, T, T_out, N, RP, in_itemsize, c_itemsize)
    bblk = batch_block if batch_block is not None else auto_bblk
    grid = (pl.cdiv(B, bblk),)

    w_bytes = 2 * ((K * N * RP + RP * N) * c_itemsize + RP * 4)
    vmem_limit = int(min(0.9 * vmem_cap,
                         max(32 * 1024 * 1024, 1.25 * (bblk * per_b + w_bytes))))

    kernel = functools.partial(_stsc_attention_kernel, pad=pad,
                               compute_dtype=compute_dtype)

    return pl.pallas_call(
        kernel,
        out_shape=jax.ShapeDtypeStruct((T_out, B, N), x_seq.dtype),
        grid_spec=pltpu.PrefetchScalarGridSpec(
            num_scalar_prefetch=0,
            grid=grid,
            in_specs=[
                pl.BlockSpec((T, bblk, N), lambda b: (0, b, 0)),
                pl.BlockSpec((K, N, RP), lambda b: (0, 0, 0)),
                pl.BlockSpec((1, RP), lambda b: (0, 0)),
                pl.BlockSpec((RP, N), lambda b: (0, 0)),
            ],
            out_specs=pl.BlockSpec((T_out, bblk, N), lambda b: (0, b, 0)),
            scratch_shapes=[pltpu.VMEM((T_out, bblk, RP), jnp.float32)],
        ),
        compiler_params=pltpu.CompilerParams(
            dimension_semantics=("parallel",),
            vmem_limit_bytes=vmem_limit),
    )(x_seq, wk, bias, w2)


def stsc_attention_reference(x_seq, conv_w, conv_b, lin_w, time_rf):
    """Pure-JAX reference matching the PyTorch forward exactly."""
    pad = (time_rf - 1) // 2
    x_C = jnp.transpose(x_seq, (1, 0, 2))                             # [B, T, N]
    x_T = jnp.transpose(x_C, (0, 2, 1))                               # [B, N, T]
    h = jax.lax.conv_general_dilated(
        x_T, conv_w, window_strides=(1,), padding=[(pad, pad)],
        dimension_numbers=("NCH", "OIH", "NCH"),
        precision=jax.lax.Precision.HIGHEST)
    h = h + conv_b[None, :, None]                                     # [B, r, T_out]
    hT = jnp.transpose(h, (0, 2, 1))                                  # [B, T_out, r]
    y = jnp.matmul(jnp.maximum(hT, 0.0), lin_w.T,
                   precision=jax.lax.Precision.HIGHEST)               # [B, T_out, N]
    D_ = 1.0 - jax.nn.sigmoid(y)
    return jnp.transpose(D_, (1, 0, 2))                               # [T_out, B, N]


if __name__ == "__main__":
    # Small shapes consistent with SHD usage: x_seq [T, B, N], dimension=2.
    T, B, N = 8, 16, 128
    time_rf = 4
    reduction = 2
    r = N // reduction

    key = jax.random.PRNGKey(0)
    kx, kw, kb, kl = jax.random.split(key, 4)

    x_seq = jax.random.normal(kx, (T, B, N), dtype=jnp.float32)
    conv_w = 0.1 * jax.random.normal(kw, (r, N, time_rf), dtype=jnp.float32)
    conv_b = 0.1 * jax.random.normal(kb, (r,), dtype=jnp.float32)
    lin_w = 0.1 * jax.random.normal(kl, (N, r), dtype=jnp.float32)

    ref = jax.block_until_ready(
        stsc_attention_reference(x_seq, conv_w, conv_b, lin_w, time_rf))

    # Exact-semantics check: f32 MXU operands, tight tolerance.
    out_f32 = jax.block_until_ready(
        stsc_attention(x_seq, conv_w, conv_b, lin_w, time_rf,
                       compute_dtype=jnp.float32))
    assert out_f32.shape == ref.shape, (out_f32.shape, ref.shape)
    assert jnp.allclose(out_f32, ref, atol=1e-4, rtol=0.0), (
        float(jnp.max(jnp.abs(out_f32 - ref))))

    # Fast path: bf16 MXU operands with f32 accumulation, loose tolerance.
    out_bf16 = jax.block_until_ready(
        stsc_attention(x_seq, conv_w, conv_b, lin_w, time_rf,
                       compute_dtype=jnp.bfloat16))
    assert out_bf16.shape == ref.shape, (out_bf16.shape, ref.shape)
    assert jnp.allclose(out_bf16, ref, atol=2e-2, rtol=0.0), (
        float(jnp.max(jnp.abs(out_bf16 - ref))))

    print("KERNEL_OK")
</pallas_src>

<mosaic_0001>
module attributes {stable_mosaic.version = 11 : i64} {
  func.func @_stsc_attention_kernel(%arg0: i32, %arg1: memref<8x8x128xf32, #tpu.memory_space<vmem>>, %arg2: memref<4x128x128xf32, #tpu.memory_space<vmem>>, %arg3: memref<1x128xf32, #tpu.memory_space<vmem>>, %arg4: memref<128x128xf32, #tpu.memory_space<vmem>>, %arg5: memref<7x8x128xf32, #tpu.memory_space<vmem>>, %arg6: memref<7x8x128xf32, #tpu.memory_space<vmem>>) attributes {dimension_semantics = [#tpu.dimension_semantics<parallel>], iteration_bounds = array<i64: 2>, scalar_prefetch = 0 : i64, scratch_operands = 1 : i64, tpu.core_type = #tpu.core_type<tc>, window_params = [{transform_indices = @transform_0, window_bounds = array<i64: 8, 8, 128>}, {pipeline_mode = #tpu.pipeline_mode<synchronous>, transform_indices = @transform_1, window_bounds = array<i64: 4, 128, 128>}, {pipeline_mode = #tpu.pipeline_mode<synchronous>, transform_indices = @transform_2, window_bounds = array<i64: 1, 128>}, {pipeline_mode = #tpu.pipeline_mode<synchronous>, transform_indices = @transform_3, window_bounds = array<i64: 128, 128>}, {transform_indices = @transform_4, window_bounds = array<i64: 7, 8, 128>}]} {
    %c0 = arith.constant 0 : index
    %c0_0 = arith.constant 0 : index
    %c0_1 = arith.constant 0 : index
    %0 = vector.load %arg1[%c0, %c0_0, %c0_1] : memref<8x8x128xf32, #tpu.memory_space<vmem>>, vector<8x8x128xf32>
    %1 = vector.shape_cast %0 : vector<8x8x128xf32> to vector<64x128xf32>
    %c0_2 = arith.constant 0 : index
    %c0_3 = arith.constant 0 : index
    %2 = vector.load %arg3[%c0_2, %c0_3] : memref<1x128xf32, #tpu.memory_space<vmem>>, vector<1x128xf32>
    %3 = vector.shape_cast %2 : vector<1x128xf32> to vector<128xf32>
    %4 = vector.shape_cast %3 : vector<128xf32> to vector<1x1x128xf32>
    %5 = vector.shape_cast %4 : vector<1x1x128xf32> to vector<1x1x128xf32>
    %6 = vector.broadcast %5 : vector<1x1x128xf32> to vector<7x8x128xf32>
    %c0_4 = arith.constant 0 : index
    %c0_5 = arith.constant 0 : index
    %c0_6 = arith.constant 0 : index
    %7 = vector.load %arg6[%c0_4, %c0_5, %c0_6] : memref<7x8x128xf32, #tpu.memory_space<vmem>>, vector<7x8x128xf32>
    tpu.vector_store %arg6[%c0_4, %c0_5, %c0_6], %6 {strides = array<i32>} : memref<7x8x128xf32, #tpu.memory_space<vmem>>, vector<7x8x128xf32>,
    %c0_7 = arith.constant 0 : index
    %c0_8 = arith.constant 0 : index
    %c0_9 = arith.constant 0 : index
    %8 = vector.load %arg2[%c0_7, %c0_8, %c0_9] : memref<4x128x128xf32, #tpu.memory_space<vmem>>, vector<1x128x128xf32>
    %9 = vector.shape_cast %8 : vector<1x128x128xf32> to vector<128x128xf32>
    %cst = arith.constant dense<0.000000e+00> : vector<64x128xf32>
    %10 = tpu.matmul %1, %9, %cst {dimension_numbers = #tpu.dot_dimension_numbers<[1], [0], [0], [1], [0, 0, 1, 1], [], []>} : vector<64x128xf32>, vector<128x128xf32>, vector<64x128xf32> -> vector<64x128xf32>
    %11 = vector.shape_cast %10 : vector<64x128xf32> to vector<8x8x128xf32>
    %c1 = arith.constant 1 : index
    %c0_10 = arith.constant 0 : index
    %c0_11 = arith.constant 0 : index
    %12 = vector.load %arg6[%c1, %c0_10, %c0_11] : memref<7x8x128xf32, #tpu.memory_space<vmem>>, vector<6x8x128xf32>
    %13 = vector.extract_strided_slice %11 {offsets = [0, 0, 0], sizes = [6, 8, 128], strides = [1, 1, 1]} : vector<8x8x128xf32> to vector<6x8x128xf32>
    %14 = arith.addf %12, %13 : vector<6x8x128xf32>
    %c1_12 = arith.constant 1 : index
    %c0_13 = arith.constant 0 : index
    %c0_14 = arith.constant 0 : index
    %15 = vector.load %arg6[%c1_12, %c0_13, %c0_14] : memref<7x8x128xf32, #tpu.memory_space<vmem>>, vector<6x8x128xf32>
    tpu.vector_store %arg6[%c1_12, %c0_13, %c0_14], %14 {strides = array<i32>} : memref<7x8x128xf32, #tpu.memory_space<vmem>>, vector<6x8x128xf32>,
    %c1_15 = arith.constant 1 : index
    %c0_16 = arith.constant 0 : index
    %c0_17 = arith.constant 0 : index
    %16 = vector.load %arg2[%c1_15, %c0_16, %c0_17] : memref<4x128x128xf32, #tpu.memory_space<vmem>>, vector<1x128x128xf32>
    %17 = vector.shape_cast %16 : vector<1x128x128xf32> to vector<128x128xf32>
    %cst_18 = arith.constant dense<0.000000e+00> : vector<64x128xf32>
    %18 = tpu.matmul %1, %17, %cst_18 {dimension_numbers = #tpu.dot_dimension_numbers<[1], [0], [0], [1], [0, 0, 1, 1], [], []>} : vector<64x128xf32>, vector<128x128xf32>, vector<64x128xf32> -> vector<64x128xf32>
    %19 = vector.shape_cast %18 : vector<64x128xf32> to vector<8x8x128xf32>
    %c0_19 = arith.constant 0 : index
    %c0_20 = arith.constant 0 : index
    %c0_21 = arith.constant 0 : index
    %20 = vector.load %arg6[%c0_19, %c0_20, %c0_21] : memref<7x8x128xf32, #tpu.memory_space<vmem>>, vector<7x8x128xf32>
    %21 = vector.extract_strided_slice %19 {offsets = [0, 0, 0], sizes = [7, 8, 128], strides = [1, 1, 1]} : vector<8x8x128xf32> to vector<7x8x128xf32>
    %22 = arith.addf %20, %21 : vector<7x8x128xf32>
    %c0_22 = arith.constant 0 : index
    %c0_23 = arith.constant 0 : index
    %c0_24 = arith.constant 0 : index
    %23 = vector.load %arg6[%c0_22, %c0_23, %c0_24] : memref<7x8x128xf32, #tpu.memory_space<vmem>>, vector<7x8x128xf32>
    tpu.vector_store %arg6[%c0_22, %c0_23, %c0_24], %22 {strides = array<i32>} : memref<7x8x128xf32, #tpu.memory_space<vmem>>, vector<7x8x128xf32>,
    %c2 = arith.constant 2 : index
    %c0_25 = arith.constant 0 : index
    %c0_26 = arith.constant 0 : index
    %24 = vector.load %arg2[%c2, %c0_25, %c0_26] : memref<4x128x128xf32, #tpu.memory_space<vmem>>, vector<1x128x128xf32>
    %25 = vector.shape_cast %24 : vector<1x128x128xf32> to vector<128x128xf32>
    %cst_27 = arith.constant dense<0.000000e+00> : vector<64x128xf32>
    %26 = tpu.matmul %1, %25, %cst_27 {dimension_numbers = #tpu.dot_dimension_numbers<[1], [0], [0], [1], [0, 0, 1, 1], [], []>} : vector<64x128xf32>, vector<128x128xf32>, vector<64x128xf32> -> vector<64x128xf32>
    %27 = vector.shape_cast %26 : vector<64x128xf32> to vector<8x8x128xf32>
    %c0_28 = arith.constant 0 : index
    %c0_29 = arith.constant 0 : index
    %c0_30 = arith.constant 0 : index
    %28 = vector.load %arg6[%c0_28, %c0_29, %c0_30] : memref<7x8x128xf32, #tpu.memory_space<vmem>>, vector<7x8x128xf32>
    %29 = vector.extract_strided_slice %27 {offsets = [1, 0, 0], sizes = [7, 8, 128], strides = [1, 1, 1]} : vector<8x8x128xf32> to vector<7x8x128xf32>
    %30 = arith.addf %28, %29 : vector<7x8x128xf32>
    %c0_31 = arith.constant 0 : index
    %c0_32 = arith.constant 0 : index
    %c0_33 = arith.constant 0 : index
    %31 = vector.load %arg6[%c0_31, %c0_32, %c0_33] : memref<7x8x128xf32, #tpu.memory_space<vmem>>, vector<7x8x128xf32>
    tpu.vector_store %arg6[%c0_31, %c0_32, %c0_33], %30 {strides = array<i32>} : memref<7x8x128xf32, #tpu.memory_space<vmem>>, vector<7x8x128xf32>,
    %c3 = arith.constant 3 : index
    %c0_34 = arith.constant 0 : index
    %c0_35 = arith.constant 0 : index
    %32 = vector.load %arg2[%c3, %c0_34, %c0_35] : memref<4x128x128xf32, #tpu.memory_space<vmem>>, vector<1x128x128xf32>
    %33 = vector.shape_cast %32 : vector<1x128x128xf32> to vector<128x128xf32>
    %cst_36 = arith.constant dense<0.000000e+00> : vector<64x128xf32>
    %34 = tpu.matmul %1, %33, %cst_36 {dimension_numbers = #tpu.dot_dimension_numbers<[1], [0], [0], [1], [0, 0, 1, 1], [], []>} : vector<64x128xf32>, vector<128x128xf32>, vector<64x128xf32> -> vector<64x128xf32>
    %35 = vector.shape_cast %34 : vector<64x128xf32> to vector<8x8x128xf32>
    %c0_37 = arith.constant 0 : index
    %c0_38 = arith.constant 0 : index
    %c0_39 = arith.constant 0 : index
    %36 = vector.load %arg6[%c0_37, %c0_38, %c0_39] : memref<7x8x128xf32, #tpu.memory_space<vmem>>, vector<6x8x128xf32>
    %37 = vector.extract_strided_slice %35 {offsets = [2, 0, 0], sizes = [6, 8, 128], strides = [1, 1, 1]} : vector<8x8x128xf32> to vector<6x8x128xf32>
    %38 = arith.addf %36, %37 : vector<6x8x128xf32>
    %c0_40 = arith.constant 0 : index
    %c0_41 = arith.constant 0 : index
    %c0_42 = arith.constant 0 : index
    %39 = vector.load %arg6[%c0_40, %c0_41, %c0_42] : memref<7x8x128xf32, #tpu.memory_space<vmem>>, vector<6x8x128xf32>
    tpu.vector_store %arg6[%c0_40, %c0_41, %c0_42], %38 {strides = array<i32>} : memref<7x8x128xf32, #tpu.memory_space<vmem>>, vector<6x8x128xf32>,
    %c0_43 = arith.constant 0 : index
    %c0_44 = arith.constant 0 : index
    %c0_45 = arith.constant 0 : index
    %40 = vector.load %arg6[%c0_43, %c0_44, %c0_45] : memref<7x8x128xf32, #tpu.memory_space<vmem>>, vector<7x8x128xf32>
    %cst_46 = arith.constant 0.000000e+00 : f32
    %41 = vector.broadcast %cst_46 : f32 to vector<7x8x128xf32>
    %42 = arith.maximumf %40, %41 : vector<7x8x128xf32>
    %43 = vector.shape_cast %42 : vector<7x8x128xf32> to vector<56x128xf32>
    %c0_47 = arith.constant 0 : index
    %c0_48 = arith.constant 0 : index
    %44 = vector.load %arg4[%c0_47, %c0_48] : memref<128x128xf32, #tpu.memory_space<vmem>>, vector<128x128xf32>
    %cst_49 = arith.constant dense<0.000000e+00> : vector<56x128xf32>
    %45 = tpu.matmul %43, %44, %cst_49 {dimension_numbers = #tpu.dot_dimension_numbers<[1], [0], [0], [1], [0, 0, 1, 1], [], []>} : vector<56x128xf32>, vector<128x128xf32>, vector<56x128xf32> -> vector<56x128xf32>
    %cst_50 = arith.constant 0.000000e+00 : f32
    %46 = vector.broadcast %cst_50 : f32 to vector<56x128xf32>
    %47 = arith.subf %46, %45 : vector<56x128xf32>
    %48 = arith.negf %47 : vector<56x128xf32>
    %49 = math.exp %48 : vector<56x128xf32>
    %cst_51 = arith.constant 1.000000e+00 : f32
    %50 = vector.broadcast %cst_51 : f32 to vector<56x128xf32>
    %51 = arith.addf %50, %49 : vector<56x128xf32>
    %52 = arith.divf %50, %51 : vector<56x128xf32>
    %53 = vector.shape_cast %52 : vector<56x128xf32> to vector<7x8x128xf32>
    %c0_52 = arith.constant 0 : index
    %c0_53 = arith.constant 0 : index
    %c0_54 = arith.constant 0 : index
    %54 = vector.load %arg5[%c0_52, %c0_53, %c0_54] : memref<7x8x128xf32, #tpu.memory_space<vmem>>, vector<7x8x128xf32>
    tpu.vector_store %arg5[%c0_52, %c0_53, %c0_54], %53 {strides = array<i32>} : memref<7x8x128xf32, #tpu.memory_space<vmem>>, vector<7x8x128xf32>,
    return
  }
  func.func @transform_0(%arg0: i32) -> (i32, i32, i32) {
    %c0_i32 = arith.constant 0 : i32
    %c0_i32_0 = arith.constant 0 : i32
    %c0_i32_1 = arith.constant 0 : i32
    return %c0_i32, %arg0, %c0_i32_0 : i32, i32, i32
  }
  func.func @transform_1(%arg0: i32) -> (i32, i32, i32) {
    %c0_i32 = arith.constant 0 : i32
    %c0_i32_0 = arith.constant 0 : i32
    %c0_i32_1 = arith.constant 0 : i32
    %c0_i32_2 = arith.constant 0 : i32
    return %c0_i32, %c0_i32_0, %c0_i32_1 : i32, i32, i32
  }
  func.func @transform_2(%arg0: i32) -> (i32, i32) {
    %c0_i32 = arith.constant 0 : i32
    %c0_i32_0 = arith.constant 0 : i32
    %c0_i32_1 = arith.constant 0 : i32
    return %c0_i32, %c0_i32_0 : i32, i32
  }
  func.func @transform_3(%arg0: i32) -> (i32, i32) {
    %c0_i32 = arith.constant 0 : i32
    %c0_i32_0 = arith.constant 0 : i32
    %c0_i32_1 = arith.constant 0 : i32
    return %c0_i32, %c0_i32_0 : i32, i32
  }
  func.func @transform_4(%arg0: i32) -> (i32, i32, i32) {
    %c0_i32 = arith.constant 0 : i32
    %c0_i32_0 = arith.constant 0 : i32
    %c0_i32_1 = arith.constant 0 : i32
    return %c0_i32, %arg0, %c0_i32_0 : i32, i32, i32
  }
}

</mosaic_0001>

<bundles_post_ra>
// kernel: tpu_custom_call.1
= control target key start
LH: loop header
LB: loop body
LE: loop exit
PB: predicated region body
PF: predicated region fallthrough
CT: control target
= control target key end

     0   :  { %9 = vsyncpa [#allocation4], 0  ;;  %s2250_s0 = inlined_call_operand.hbm [shape: f32[8,16,128], index: 0, kind: input, shape index: {}]   ;;  %s2251_s1 = inlined_call_operand.hbm [shape: f32[4,128,128], index: 1, kind: input, shape index: {}]   ;;  %s2252_s2 = inlined_call_operand.vmem [shape: f32[1,128], index: 2, kind: input, shape index: {}]   ;;  %s2253_s3 = inlined_call_operand.hbm [shape: f32[128,128], index: 3, kind: input, shape index: {}]   ;;  %s2254_s4 = inlined_call_operand.hbm [shape: f32[7,16,128], index: 4, kind: output, shape index: {}]  }
   0x1   :  { %11 = vsyncpa [#allocation4 + $0x1], 0 }
   0x2   :  { %12 = vsyncpa [#allocation7], 0 }
   0x3   :  { %13 = vsyncpa [#allocation5], 0 }
   0x4   :  { %15 = vsyncpa [#allocation5 + $0x1], 0  ;;  %s1940_s15 = smov 0   ;;  %s1942_s16 = smov 0  }
   0x5   :  { %s1944_s17 = smov 0   ;;  %s1946_s18 = smov 0  }
   0x6 LB: > { %s1961_s19 = sadd.s32 4294967295, %s1900_s18   ;;  %s1117_s20 = sadd.s32 4294967294, %s1900_s18   ;;  %s1900_s18 = sphi %s1946_s18, %s2280_s18   ;;  %s1896_s17 = sphi %s1944_s17, %s2279_s17   ;;  %s1892_s16 = sphi %s1942_s16, %s2278_s16   ;;  %s1888_s15 = sphi %s1940_s15, %s2277_s15  }
   0x7   : > { %s1965_s21 = sadd.s32 1, %s1900_s18   ;;  %s28_s22 = sadd.s32 1, %s1896_s17 }
   0x8   : > { %s25_s23 = ssub.s32 %s1900_s18, %s1965_s21  ;;  %p35_p0 = scmp.ne.s32.totalorder %s1896_s17, %s1892_s16 }
   0x9   : > { %p26_p1 = scmp.eq.s32.totalorder %s25_s23, 0  ;;  %p36_p2 = scmp.eq.s32.totalorder %s1900_s18, 0 }
   0xa   : > { %p41_p3 = scmp.ne.s32.totalorder %s1892_s16, %s1888_s15  ;;  %p2255_p4 = scmp.eq.s32.totalorder %s1961_s19, 0 }
   0xb   : > { %s1977_s24 = scalar_select %p26_p1, %s1896_s17, %s28_s22  }
   0xc   : > { %p1979_p5 = por %p36_p2, %p35_p0  ;;  %p1985_p6 = por %p2255_p4, %p41_p3 }
   0xd   : > { %p128_p7 = scmp.eq.s32.totalorder %s1961_s19, 1  ;;  %p134_p8 = scmp.eq.s32.totalorder %s1117_s20, 1 }
   0xe   : > { %s2260_s25 = scalar_select %p1979_p5, 1, 0 }
   0xf   : > { %s2261_s26 = scalar_select %p1985_p6, 1, 0 }
  0x10   : > { %p1118_p9 = scmp.ge.s32.totalorder %s1900_s18, 1  ;;  %p141_p10 = scmp.lt.s32.totalorder %s1900_s18, 3 }
  0x11   : > { %p1992_p11 = por %p128_p7, %p35_p0  ;;  %p1996_p12 = por %p134_p8, %p41_p3 }
  0x12   : > { %p2000_p13 = pnand %p1118_p9, %p141_p10  ;;  %s1902_s30 = smov [#allocation6]  }
  0x13   : > { %s2262_s27 = scalar_select %p1992_p11, 1, 0 }
  0x14   : > { %s2263_s28 = scalar_select %p1996_p12, 1, 0 }
  0x15   : > { %s2264_s29 = scalar_select %p2000_p13, 1, 0 }
  0x16   : > { %p1652_p1 = pneg %p2000_p13  ;;  %s153_s5 = sshll.u32 %s1902_s30, 4  ;;  %s154_s5 = int_to_ptr.vmem [resolvable:$true] %s153_s5 }
  0x17   : > { %s1903_s7 = smov [#allocation8]   ;;  %s1744_s11 = scalar_lea.hbm %s2251_s1, 8192 }
  0x18   : > { %p2008_p2 = pnand %p1652_p1, %p2255_p4  ;;  %s169_s8 = sshll.u32 %s1903_s7, 4  ;;  %s170_s8 = int_to_ptr.vmem [resolvable:$true] %s169_s8 }
  0x19   : > { %p1745_p7 = scmp.ne.s32.totalorder %s2251_s1, %s1744_s11  ;;  %p1751_p1 = scmp.lt.u32.totalorder %s1744_s11, %s2251_s1 }
  0x1a   : > { %p1746_p8 = pneg %p2008_p2 }
  0x1c   : > { %p1747_p9 = pnand %p1746_p8, %p1745_p7 }
  0x1e   : > { %p1748_p10 = pneg %p1747_p9 }
  0x20   : > { %p1753_p0 = pnand %p1751_p1, %p1748_p10 }
  0x22   : > { %1756 = shalt.err (!%p1753_p0)
}
  0x23   : > { %s1757_s22 = scalar_lea.vmem %s154_s5, 8192  ;;  %p1765_p11 = scmp.lt.s32.totalorder %s154_s5, %s154_s5 }
  0x24   : > { %p1758_p4 = scmp.ne.s32.totalorder %s154_s5, %s1757_s22  ;;  %p1766_p6 = scmp.lt.s32.totalorder %s1757_s22, %s1757_s22 }
  0x26   : > { %p1760_p3 = pnand %p1758_p4, %p1746_p8  ;;  %p1767_p13 = por %p1766_p6, %p1765_p11 }
  0x28   : > { %p1761_p12 = pneg %p1760_p3 }
  0x2a   : > { %p1768_p5 = pnand %p1767_p13, %p1761_p12 }
  0x2c   : > { %1771 = shalt.err (!%p1768_p5)
}
  0x2d   : > { %s1904_s23 = smov 128   ;;  %s1905_s30 = smov 8  }
  0x2e   : > { %1655 = dma.hbm_to_vmem [thread:$0]  (!%p2008_p2), %s2251_s1, 8192, %s154_s5, [#allocation7], %s1904_s23, %s1904_s23, %s1905_s30  }
  0x2f   : > { %p2266_p4 = scmp.ne.s32.totalorder %s2260_s25, 0  ;;  %p2267_p0 = scmp.lt.s32.totalorder %s1900_s18, 2 }
  0x30   : > { %s1772_s13 = scalar_lea.hbm %s2253_s3, 2048 }
  0x31   : > { %p2043_p3 = pnand %p2267_p0, %p2266_p4  ;;  %p1773_p5 = scmp.ne.s32.totalorder %s2253_s3, %s1772_s13 }
  0x32   : > { %p1779_p12 = scmp.lt.u32.totalorder %s1772_s13, %s2253_s3 }
  0x33   : > { %s2268_s10 = scalar_select %p2043_p3, 1, 0 }
  0x34   : > { %p1775_p6 = pnand %p1773_p5, %p1746_p8 }
  0x36   : > { %p1776_p11 = pneg %p1775_p6 }
  0x38   : > { %p1781_p13 = pnand %p1779_p12, %p1776_p11 }
  0x3a   : > { %1784 = shalt.err (!%p1781_p13)
}
  0x3b   : > { %s1785_s22 = scalar_lea.vmem %s170_s8, 2048  ;;  %p1793_p1 = scmp.lt.s32.totalorder %s170_s8, %s170_s8 }
  0x3c   : > { %p1786_p7 = scmp.ne.s32.totalorder %s170_s8, %s1785_s22  ;;  %p1794_p4 = scmp.lt.s32.totalorder %s1785_s22, %s1785_s22 }
  0x3e   : > { %p1788_p9 = pnand %p1786_p7, %p1746_p8  ;;  %p1795_p0 = por %p1794_p4, %p1793_p1 }
  0x40   : > { %p1789_p10 = pneg %p1788_p9 }
  0x42   : > { %p1796_p3 = pnand %p1795_p0, %p1789_p10 }
  0x44   : > { %1799 = shalt.err (!%p1796_p3)
}
  0x45   : > { %1658 = dma.hbm_to_vmem [thread:$0]  (!%p2008_p2), %s2253_s3, 2048, %s170_s8, [#allocation7], %s1904_s23, %s1904_s23, %s1905_s30  }
  0x46   : > { %s183_s11 = sand.u32 1, %s1896_s17   ;;  %s1123_s13 = sshll.u32 %s1900_s18, 7 }
  0x47   : > { %s1122_s12 = sshll.u32 %s183_s11, 6  ;;  %s2075_s5 = scalar_lea.hbm %s2250_s0, %s1123_s13 }
  0x48   : > { %s187_s6 = scalar_lea.vmem [#allocation3], %s1122_s12  ;;  %s2079_s22 = scalar_lea.sflag [#allocation4], %s183_s11 }
  0x49   : > { %s193_s25 = sshll.u32 %s187_s6, 4  ;;  %s1800_s7 = scalar_lea.hbm %s2075_s5, 1024  ;;  %s2077_s25 = int_to_ptr.vmem [resolvable:$true] %s193_s25 }
  0x4a   : > { %p1801_p2 = scmp.ne.s32.totalorder %s2075_s5, %s1800_s7  ;;  %p2269_p8 = scmp.ne.s32.totalorder %s2268_s10, 0 }
  0x4b   : > { %s1805_s13 = scalar_lea.hbm %s2250_s0, 2048  ;;  %p1806_p11 = scmp.lt.u32.totalorder %s2075_s5, %s2250_s0 }
  0x4c   : > { %p1802_p3 = pneg %p2269_p8  ;;  %p1807_p12 = scmp.lt.u32.totalorder %s1805_s13, %s1800_s7 }
  0x4d   : > { %p1809_p7 = scmp.lt.u32.totalorder %s1800_s7, %s2075_s5 }
  0x4e   : > { %p1803_p5 = pnand %p1802_p3, %p1801_p2  ;;  %p1808_p13 = por %p1807_p12, %p1806_p11 }
  0x50   : > { %p1804_p6 = pneg %p1803_p5  ;;  %p1810_p9 = por %p1809_p7, %p1808_p13 }
  0x52   : > { %p1811_p10 = pnand %p1810_p9, %p1804_p6 }
  0x54   : > { %1814 = shalt.err (!%p1811_p10)
}
  0x55   : > { %s1815_s11 = scalar_lea.vmem %s2077_s25, 1024  ;;  %s1906_s12 = smov [#allocation3]  }
  0x56   : > { %p1816_p1 = scmp.ne.s32.totalorder %s2077_s25, %s1815_s11  ;;  %s1820_s6 = sshll.u32 %s1906_s12, 4  ;;  %s1821_s6 = int_to_ptr.vmem [resolvable:$false] %s1820_s6 }
  0x57   : > { %s1822_s8 = scalar_lea.vmem %s1821_s6, 2048  ;;  %p1823_p2 = scmp.lt.s32.totalorder %s2077_s25, %s1821_s6 }
  0x58   : > { %p1818_p4 = pnand %p1816_p1, %p1802_p3  ;;  %p1824_p5 = scmp.lt.s32.totalorder %s1822_s8, %s1815_s11 }
  0x5a   : > { %p1819_p0 = pneg %p1818_p4  ;;  %p1825_p11 = por %p1824_p5, %p1823_p2 }
  0x5c   : > { %p1826_p12 = pnand %p1825_p11, %p1819_p0 }
  0x5e   : > { %1829 = shalt.err (!%p1826_p12)
}
  0x5f   : > { %s1907_s7 = smov 256   ;;  %p2270_p3 = scmp.ne.s32.totalorder %s2264_s29, 0 }
  0x60   : > { %1662 = dma.hbm_to_vmem [thread:$0]  (!%p2269_p8), %s2075_s5, 1024, %s2077_s25, %s2079_s22, %s1907_s7, %s1904_s23, %s1905_s30  }
  0x61   : > { %205 = sbr.rel (%p2270_p3) target bundleno = 708 (0x2c4), region = 36  ;;  %s2112_s9 = sand.u32 (!%p2270_p3), 1, %s1892_s16  }
  0x62   : > { %s1125_s13 = sshll.u32 (!%p2270_p3), %s2112_s9, 6  ;;  %s208_s14 = scalar_lea.sflag (!%p2270_p3), [#allocation4], %s2112_s9 }
  0x63   : > { %s2116_s20 = scalar_lea.vmem (!%p2270_p3), [#allocation3], %s1125_s13  ;;  %p2271_p6 = scmp.ne.s32.totalorder (!%p2270_p3), %s2261_s26, 0 }
  0x68   : > { %1875 = dma.done.wait (%p2271_p6), %s208_s14, 1024  }
  0x69   : > { %1877 = vsyncadd (%p2271_p6), %s208_s14, 4294966272  ;;  %p2272_p8 = scmp.eq.s32.totalorder %s1961_s19, 0 }
  0x6b   : > { %1879 = dma.done.wait (%p2272_p8), [#allocation7], 10240   ;;  %p2273_p13 = pmov %p2272_p8 }
  0x6c   : > { %v266_v0 = vld [vmem:[#allocation6] sm:$0xff]  ;;  %v267_v1 = vld [vmem:[#allocation6 + $0x8] sm:$0xff]  ;;  %v268_v2 = vld [vmem:[#allocation6 + $0x10] sm:$0xff]  ;;  %vm1909_vm0 = vmmov 0   ;;  %s1639_s23 = smul.u32 56, %s2112_s9  ;;  %s1136_s10 = sshll.u32 %s1961_s19, 7 }
  0x6d   : > { %1881 = vsyncadd (%p2273_p13), [#allocation7], 4294957056  ;;  %v1487_v3 = vpack.c.bf16 %v267_v1, %v266_v0  ;;  %v269_v4 = vld [vmem:[#allocation6 + $0x18] sm:$0xff]  ;;  %v270_v6 = vld [vmem:[#allocation6 + $0x20] sm:$0xff]  ;;  %s2204_s11 = scalar_lea.hbm %s2254_s4, %s1136_s10  ;;  %s1013_s12 = scalar_lea.sflag [#allocation5], %s2112_s9 }
  0x6e   : > { %v1491_v5 = vpack.c.bf16 %v269_v4, %v268_v2  ;;  %v271_v7 = vld [vmem:[#allocation6 + $0x28] sm:$0xff]  ;;  %v547_v9 = vld [vmem:[#allocation6 + $0x100] sm:$0xff]  ;;  %v272_v11 = vld [vmem:[#allocation6 + $0x30] sm:$0xff]  ;;  %s243_s30 = scalar_lea.vmem [#allocation9], %s1639_s23  ;;  %p2274_p9 = scmp.ne.s32.totalorder %s2262_s27, 0 }
  0x6f   : > { %1488 = vmatprep.subr.bf16.mxu1 %v1487_v3  ;;  %v1495_v8 = vpack.c.bf16 %v271_v7, %v270_v6  ;;  %v548_v10 = vld [vmem:[#allocation6 + $0x108] sm:$0xff]  ;;  %v273_v12 = vld [vmem:[#allocation6 + $0x38] sm:$0xff]  ;;  %v2127_v14 = vld [vmem:[%s2116_s20] sm:$0xff]  ;;  %s1025_s5 = sshll.u32 %s243_s30, 4  ;;  %s1911_s19 = smov [#allocation9]   ;;  %s2206_s5 = int_to_ptr.vmem [resolvable:$true] %s1025_s5 }
  0x70   : > { %1490 = vmatpush3.bf16.msra.mxu1 %v1487_v3  ;;  %v1551_v13 = vpack.c.bf16 %v548_v10, %v547_v9  ;;  %1290 = vmatprep.mubr.f32.mxu1 %v2127_v14  ;;  %v549_v15 = vld [vmem:[#allocation6 + $0x110] sm:$0xff]  ;;  %v550_v16 = vld [vmem:[#allocation6 + $0x118] sm:$0xff]  ;;  %v551_v18 = vld [vmem:[#allocation6 + $0x120] sm:$0xff]  ;;  %v1499_v19 = vpack.c.bf16 %v273_v12, %v272_v11  ;;  %s1830_s6 = scalar_lea.vmem %s2206_s5, 896  ;;  %s1834_s8 = sshll.u32 %s1911_s19, 4  ;;  %s1835_s8 = int_to_ptr.vmem [resolvable:$false] %s1834_s8 }
  0x71   : > { %1492 = vmatprep.subr.bf16.mxu1 %v1491_v5  ;;  %1378 = vmatprep.mubr.f32.mxu0 %v2127_v14  ;;  %v1555_v17 = vpack.c.bf16 %v550_v16, %v549_v15  ;;  %v552_v20 = vld [vmem:[#allocation6 + $0x128] sm:$0xff]  ;;  %v274_v21 = vld [vmem:[#allocation6 + $0x40] sm:$0xff]  ;;  %v553_v24 = vld [vmem:[#allocation6 + $0x130] sm:$0xff]  ;;  %p1831_p7 = scmp.ne.s32.totalorder %s2206_s5, %s1830_s6  ;;  %s1836_s7 = scalar_lea.vmem %s1835_s8, 1792 }
  0x72   : > { %1552 = vmatprep.subr.bf16.mxu0 %v1551_v13  ;;  %v275_v22 = vld [vmem:[#allocation6 + $0x48] sm:$0xff]  ;;  %v1559_v23 = vpack.c.bf16 %v552_v20, %v551_v18  ;;  %v554_v25 = vld [vmem:[#allocation6 + $0x138] sm:$0xff]  ;;  %v276_v27 = vld [vmem:[#allocation6 + $0x50] sm:$0xff]  ;;  %p1837_p4 = scmp.lt.s32.totalorder %s2206_s5, %s1835_s8  ;;  %p1838_p0 = scmp.lt.s32.totalorder %s1836_s7, %s1830_s6 }
  0x73   : > { %1554 = vmatpush3.bf16.msra.mxu0 %v1551_v13  ;;  %v1503_v26 = vpack.c.bf16 %v275_v22, %v274_v21  ;;  %v277_v28 = vld [vmem:[#allocation6 + $0x58] sm:$0xff]  ;;  %v1563_v29 = vpack.c.bf16 %v554_v25, %v553_v24  ;;  %v555_v30 = vld [vmem:[#allocation6 + $0x140] sm:$0xff]  ;;  %v556_v31 = vld [vmem:[#allocation6 + $0x148] sm:$0xff]  ;;  %p1832_p10 = pnand %p1831_p7, %p2274_p9 }
  0x74   : > { %1494 = vmatpush3.bf16.msra.mxu1 %v1491_v5  ;;  %1556 = vmatprep.subr.bf16.mxu0 %v1555_v17  ;;  %v1507_v32 = vpack.c.bf16 %v277_v28, %v276_v27  ;;  %v278_v33 = vld [vmem:[#allocation6 + $0x60] sm:$0xff]  ;;  %v279_v34 = vld [vmem:[#allocation6 + $0x68] sm:$0xff]  ;;  %v1567_v35 = vpack.c.bf16 %v556_v31, %v555_v30  ;;  %v557_v36 = vld [vmem:[#allocation6 + $0x150] sm:$0xff]  ;;  %p1839_p2 = por %p1838_p0, %p1837_p4 }
  0x75   : > { %1496 = vmatprep.subr.bf16.mxu1 %v1495_v8  ;;  %v558_v37 = vld [vmem:[#allocation6 + $0x158] sm:$0xff]  ;;  %v1511_v38 = vpack.c.bf16 %v279_v34, %v278_v33  ;;  %v280_v39 = vld [vmem:[#allocation6 + $0x70] sm:$0xff]  ;;  %v559_v42 = vld [vmem:[#allocation6 + $0x160] sm:$0xff]  ;;  %p1833_p1 = pneg %p1832_p10 }
  0x76   : > { %v281_v40 = vld [vmem:[#allocation6 + $0x78] sm:$0xff]  ;;  %v1571_v41 = vpack.c.bf16 %v558_v37, %v557_v36  ;;  %v560_v43 = vld [vmem:[#allocation6 + $0x168] sm:$0xff]  ;;  %v405_v45 = vld [vmem:[#allocation6 + $0x80] sm:$0xff] }
  0x77   : > { %1558 = vmatpush3.bf16.msra.mxu0 %v1555_v17  ;;  %v1515_v44 = vpack.c.bf16 %v281_v40, %v280_v39  ;;  %v406_v46 = vld [vmem:[#allocation6 + $0x88] sm:$0xff]  ;;  %v1575_v47 = vpack.c.bf16 %v560_v43, %v559_v42  ;;  %v561_v48 = vld [vmem:[#allocation6 + $0x170] sm:$0xff]  ;;  %v562_v49 = vld [vmem:[#allocation6 + $0x178] sm:$0xff]  ;;  %v1908_v43 = vmov 0.0|0.0   ;;  %p1840_p5 = pnand %p1839_p2, %p1833_p1 }
  0x78   : > { %1498 = vmatpush3.bf16.msra.mxu1 %v1495_v8  ;;  %1560 = vmatprep.subr.bf16.mxu0 %v1559_v23  ;;  %v1519_v50 = vpack.c.bf16 %v406_v46, %v405_v45  ;;  %v407_v51 = vld [vmem:[#allocation6 + $0x90] sm:$0xff]  ;;  %v408_v52 = vld [vmem:[#allocation6 + $0x98] sm:$0xff]  ;;  %v1579_v53 = vpack.c.bf16 %v562_v49, %v561_v48  ;;  %v2132_v54 = vld [vmem:[%s2116_s20 + $0x8] sm:$0xff] }
  0x79   : > { %1500 = vmatprep.subr.bf16.mxu1 %v1499_v19  ;;  %v1523_v55 = vpack.c.bf16 %v408_v52, %v407_v51  ;;  %v2135_v56 = vld [vmem:[%s2116_s20 + $0x10] sm:$0xff]  ;;  %v409_v57 = vld [vmem:[#allocation6 + $0xa0] sm:$0xff]  ;;  %v410_v58 = vld [vmem:[#allocation6 + $0xa8] sm:$0xff] }
  0x7a   : > { %v2140_v59 = vld [vmem:[%s2116_s20 + $0x18] sm:$0xff]  ;;  %v1527_v60 = vpack.c.bf16 %v410_v58, %v409_v57  ;;  %v2143_v61 = vld [vmem:[%s2116_s20 + $0x20] sm:$0xff]  ;;  %v411_v62 = vld [vmem:[#allocation6 + $0xb0] sm:$0xff] }
  0x7b   : > { %1562 = vmatpush3.bf16.msra.mxu0 %v1559_v23  ;;  %v412_v63 = vld [vmem:[#allocation6 + $0xb8] sm:$0xff]  ;;  %v2148_v0 = vld [vmem:[%s2116_s20 + $0x28] sm:$0xff]  ;;  %v2151_v2 = vld [vmem:[%s2116_s20 + $0x30] sm:$0xff] }
  0x7c   : > { %1502 = vmatpush3.bf16.msra.mxu1 %v1499_v19  ;;  %1564 = vmatprep.subr.bf16.mxu0 %v1563_v29  ;;  %v1531_v1 = vpack.c.bf16 %v412_v63, %v411_v62  ;;  %v413_v3 = vld [vmem:[#allocation6 + $0xc0] sm:$0xff]  ;;  %v414_v4 = vld [vmem:[#allocation6 + $0xc8] sm:$0xff]  ;;  %v2158_v5 = vld [vmem:[%s2116_s20 + $0x38] sm:$0xff] }
  0x7d   : > { %1504 = vmatprep.subr.bf16.mxu1 %v1503_v26  ;;  %v1535_v6 = vpack.c.bf16 %v414_v4, %v413_v3  ;;  %v415_v7 = vld [vmem:[#allocation6 + $0xd0] sm:$0xff]  ;;  %v416_v8 = vld [vmem:[#allocation6 + $0xd8] sm:$0xff]  ;;  %v417_v10 = vld [vmem:[#allocation6 + $0xe0] sm:$0xff] }
  0x7e   : > { %v1539_v9 = vpack.c.bf16 %v416_v8, %v415_v7  ;;  %v418_v11 = vld [vmem:[#allocation6 + $0xe8] sm:$0xff]  ;;  %v419_v13 = vld [vmem:[#allocation6 + $0xf0] sm:$0xff]  ;;  %v420_v15 = vld [vmem:[#allocation6 + $0xf8] sm:$0xff] }
  0x7f   : > { %1566 = vmatpush3.bf16.msra.mxu0 %v1563_v29  ;;  %v1543_v12 = vpack.c.bf16 %v418_v11, %v417_v10  ;;  %v1547_v16 = vpack.c.bf16 %v420_v15, %v419_v13  ;;  %v689_v17 = vld [vmem:[#allocation6 + $0x180] sm:$0xff]  ;;  %v690_v18 = vld [vmem:[#allocation6 + $0x188] sm:$0xff]  ;;  %v691_v20 = vld [vmem:[#allocation6 + $0x190] sm:$0xff] }
  0x80   : > { %1506 = vmatpush3.bf16.msra.mxu1 %v1503_v26  ;;  %1568 = vmatprep.subr.bf16.mxu0 %v1567_v35  ;;  %v1583_v19 = vpack.c.bf16 %v690_v18, %v689_v17  ;;  %v692_v21 = vld [vmem:[#allocation6 + $0x198] sm:$0xff]  ;;  %v693_v23 = vld [vmem:[#allocation6 + $0x1a0] sm:$0xff]  ;;  %v694_v24 = vld [vmem:[#allocation6 + $0x1a8] sm:$0xff] }
  0x81   : > { %1508 = vmatprep.subr.bf16.mxu1 %v1507_v32  ;;  %v1587_v22 = vpack.c.bf16 %v692_v21, %v691_v20  ;;  %v1591_v25 = vpack.c.bf16 %v694_v24, %v693_v23  ;;  %v695_v26 = vld [vmem:[#allocation6 + $0x1b0] sm:$0xff]  ;;  %v696_v27 = vld [vmem:[#allocation6 + $0x1b8] sm:$0xff]  ;;  %v697_v29 = vld [vmem:[#allocation6 + $0x1c0] sm:$0xff] }
  0x82   : > { %v1595_v28 = vpack.c.bf16 %v696_v27, %v695_v26  ;;  %v698_v30 = vld [vmem:[#allocation6 + $0x1c8] sm:$0xff]  ;;  %v700_v33 = vld [vmem:[#allocation6 + $0x1d8] sm:$0xff]  ;;  %v854_v62 = vld [vmem:[#allocation8 + $0x70] sm:$0xff] }
  0x83   : > { %1570 = vmatpush3.bf16.msra.mxu0 %v1567_v35  ;;  %v1599_v31 = vpack.c.bf16 %v698_v30, %v697_v29  ;;  %v701_v35 = vld [vmem:[#allocation6 + $0x1e0] sm:$0xff]  ;;  %v702_v36 = vld [vmem:[#allocation6 + $0x1e8] sm:$0xff]  ;;  %v704_v39 = vld [vmem:[#allocation6 + $0x1f8] sm:$0xff] }
  0x84   : > { %1510 = vmatpush3.bf16.msra.mxu1 %v1507_v32  ;;  %1572 = vmatprep.subr.bf16.mxu0 %v1571_v41  ;;  %v699_v32 = vld [vmem:[#allocation6 + $0x1d0] sm:$0xff]  ;;  %v1607_v37 = vpack.c.bf16 %v702_v36, %v701_v35  ;;  %v843_v45 = vld [vmem:[#allocation8 + $0x18] sm:$0xff]  ;;  %v845_v48 = vld [vmem:[#allocation8 + $0x28] sm:$0xff] }
  0x85   : > { %1512 = vmatprep.subr.bf16.mxu1 %v1511_v38  ;;  %v1603_v34 = vpack.c.bf16 %v700_v33, %v699_v32  ;;  %v847_v51 = vld [vmem:[#allocation8 + $0x38] sm:$0xff] }
  0x86   : > { %v851_v57 = vld [vmem:[#allocation8 + $0x58] sm:$0xff] }
  0x87   : > { %1574 = vmatpush3.bf16.msra.mxu0 %v1571_v41  ;;  %v841_v41 = vld [vmem:[#allocation8 + $0x8] sm:$0xff]  ;;  %v855_v63 = vld [vmem:[#allocation8 + $0x78] sm:$0xff] }
  0x88   : > { %1514 = vmatpush3.bf16.msra.mxu1 %v1511_v38  ;;  %1576 = vmatprep.subr.bf16.mxu0 %v1575_v47  ;;  %v703_v38 = vld [vmem:[#allocation6 + $0x1f0] sm:$0xff] }
  0x89   : > { %1516 = vmatprep.subr.bf16.mxu1 %v1515_v44  ;;  %v1611_v40 = vpack.c.bf16 %v704_v39, %v703_v38 }
  0x8b   : > { %1578 = vmatpush3.bf16.msra.mxu0 %v1575_v47  ;;  %v844_v47 = vld [vmem:[#allocation8 + $0x20] sm:$0xff] }
  0x8c   : > { %1518 = vmatpush3.bf16.msra.mxu1 %v1515_v44  ;;  %1580 = vmatprep.subr.bf16.mxu0 %v1579_v53  ;;  %v842_v44 = vld [vmem:[#allocation8 + $0x10] sm:$0xff]  ;;  %v1622_v49 = vpack.c.bf16 %v845_v48, %v844_v47 }
  0x8d   : > { %1520 = vmatprep.subr.bf16.mxu1 %v1519_v50  ;;  %v1619_v46 = vpack.c.bf16 %v843_v45, %v842_v44 }
  0x8f   : > { %1291 = vmatmul.mubr.f32.vlgmr.msra.gmra.mrb[0].mxu1 %v2132_v54  ;;  %1582 = vmatpush3.bf16.msra.mxu0 %v1579_v53  ;;  %v848_v53 = vld [vmem:[#allocation8 + $0x40] sm:$0xff] }
  0x90   : > { %1522 = vmatpush3.bf16.msra.mxu1 %v1519_v50  ;;  %1293 = vmatprep.mubr.f32.mxu1 %v2135_v56  ;;  %v846_v50 = vld [vmem:[#allocation8 + $0x30] sm:$0xff] }
  0x91   : > { %1524 = vmatprep.subr.bf16.mxu1 %v1523_v55  ;;  %1615 = vmatprep.subr.bf16.mxu0 %v1908_v43  ;;  %v1625_v52 = vpack.c.bf16 %v847_v51, %v846_v50 }
  0x92   : > { %1379 = vmatmul.mubr.f32.vlgmr.msra.gmra.mrb[0].mxu0 %v2132_v54 }
  0x93   : > { %1294 = vmatmul.mubr.f32.gmra.mrb[2].mxu1 %v2140_v59  ;;  %1381 = vmatprep.mubr.f32.mxu0 %v2135_v56 }
  0x94   : > { %1526 = vmatpush3.bf16.msra.mxu1 %v1523_v55  ;;  %1296 = vmatprep.mubr.f32.mxu1 %v2143_v61 }
  0x95   : > { %1528 = vmatprep.subr.bf16.mxu1 %v1527_v60 }
  0x96   : > { %1382 = vmatmul.mubr.f32.gmra.mrb[2].mxu0 %v2140_v59 }
  0x97   : > { %1297 = vmatmul.mubr.f32.gmra.mrb[4].mxu1 %v2148_v0  ;;  %1384 = vmatprep.mubr.f32.mxu0 %v2143_v61 }
  0x98   : > { %1530 = vmatpush3.bf16.msra.mxu1 %v1527_v60  ;;  %1299 = vmatprep.mubr.f32.mxu1 %v2151_v2  ;;  %v853_v60 = vld [vmem:[#allocation8 + $0x68] sm:$0xff] }
  0x99   : > { %1532 = vmatprep.subr.bf16.mxu1 %v1531_v1 }
  0x9a   : > { %1385 = vmatmul.mubr.f32.gmra.mrb[4].mxu0 %v2148_v0 }
  0x9b   : > { %1300 = vmatmul.mubr.f32.gmra.mrb[6].mxu1 %v2158_v5  ;;  %1387 = vmatprep.mubr.f32.mxu0 %v2151_v2 }
  0x9c   : > { %1534 = vmatpush3.bf16.msra.mxu1 %v1531_v1  ;;  %1334 = vmatprep.mubr.f32.mxu1 %v2127_v14  ;;  %v1910_v1 = vmov 0.0  }
  0x9d   : > { %1536 = vmatprep.subr.bf16.mxu1 %v1535_v6 }
  0x9e   : > { %1388 = vmatmul.mubr.f32.gmra.mrb[6].mxu0 %v2158_v5 }
  0x9f   : > { %1466 = vmatprep.mubr.msk.f32.mxu0 %vm1909_vm0, %v1910_v1 }
  0xa0   : > { %1538 = vmatpush3.bf16.msra.mxu1 %v1535_v6 }
  0xa1   : > { %1540 = vmatprep.subr.bf16.mxu1 %v1539_v9 }
  0xa4   : > { %1542 = vmatpush3.bf16.msra.mxu1 %v1539_v9 }
  0xa5   : > { %1544 = vmatprep.subr.bf16.mxu1 %v1543_v12 }
  0xa8   : > { %1546 = vmatpush3.bf16.msra.mxu1 %v1543_v12 }
  0xa9   : > { %1548 = vmatprep.subr.bf16.mxu1 %v1547_v16 }
  0xac   : > { %1550 = vmatpush3.bf16.msra.mxu1 %v1547_v16 }
  0xad   : > { %1584 = vmatprep.subr.bf16.mxu1 %v1583_v19 }
  0xaf   : > { %1335 = vmatmul.mubr.f32.vlgmr.msra.gmra.mrb[8].mxu1 %v2132_v54 }
  0xb0   : > { %1586 = vmatpush3.bf16.msra.mxu1 %v1583_v19  ;;  %1337 = vmatprep.mubr.f32.mxu1 %v2135_v56  ;;  %v1128_v19 = vld [vmem:[%s2252_s2] ss:$0 sm:$0xff] }
  0xb1   : > { %1588 = vmatprep.subr.bf16.mxu1 %v1587_v22 }
  0xb3   : > { %1338 = vmatmul.mubr.f32.gmra.mrb[10].mxu1 %v2140_v59 }
  0xb4   : > { %1590 = vmatpush3.bf16.msra.mxu1 %v1587_v22  ;;  %1340 = vmatprep.mubr.f32.mxu1 %v2143_v61 }
  0xb5   : > { %1592 = vmatprep.subr.bf16.mxu1 %v1591_v25 }
  0xb7   : > { %1341 = vmatmul.mubr.f32.gmra.mrb[12].mxu1 %v2148_v0 }
  0xb8   : > { %1594 = vmatpush3.bf16.msra.mxu1 %v1591_v25  ;;  %1343 = vmatprep.mubr.f32.mxu1 %v2151_v2 }
  0xb9   : > { %1596 = vmatprep.subr.bf16.mxu1 %v1595_v28 }
  0xbb   : > { %1344 = vmatmul.mubr.f32.gmra.mrb[14].mxu1 %v2158_v5 }
  0xbc   : > { %1598 = vmatpush3.bf16.msra.mxu1 %v1595_v28  ;;  %1422 = vmatprep.mubr.f32.mxu1 %v2127_v14  ;;  %v840_v14 = vld [vmem:[#allocation8] sm:$0xff] }
  0xbd   : > { %1600 = vmatprep.subr.bf16.mxu1 %v1599_v31  ;;  %v1616_v42 = vpack.c.bf16 %v841_v41, %v840_v14 }
  0xbf   : > { %1617 = vmatpush3.bf16.msra.mxu0 %v1616_v42 }
  0xc0   : > { %1602 = vmatpush3.bf16.msra.mxu1 %v1599_v31  ;;  %1618 = vmatprep.subr.bf16.mxu0 %v1908_v43 }
  0xc1   : > { %1604 = vmatprep.subr.bf16.mxu1 %v1603_v34 }
  0xc3   : > { %1620 = vmatpush3.bf16.msra.mxu0 %v1619_v46 }
  0xc4   : > { %1606 = vmatpush3.bf16.msra.mxu1 %v1603_v34  ;;  %1621 = vmatprep.subr.bf16.mxu0 %v1908_v43 }
  0xc5   : > { %1608 = vmatprep.subr.bf16.mxu1 %v1607_v37 }
  0xc7   : > { %1623 = vmatpush3.bf16.msra.mxu0 %v1622_v49 }
  0xc8   : > { %1610 = vmatpush3.bf16.msra.mxu1 %v1607_v37  ;;  %1624 = vmatprep.subr.bf16.mxu0 %v1908_v43 }
  0xc9   : > { %1612 = vmatprep.subr.bf16.mxu1 %v1611_v40 }
  0xcb   : > { %1626 = vmatpush3.bf16.msra.mxu0 %v1625_v52 }
  0xcc   : > { %1614 = vmatpush3.bf16.msra.mxu1 %v1611_v40  ;;  %1627 = vmatprep.subr.bf16.mxu0 %v1908_v43 }
  0xcf   : > { %1423 = vmatmul.mubr.f32.vlgmr.msra.gmra.mrb[16].mxu1 %v2132_v54  ;;  %v849_v54 = vld [vmem:[#allocation8 + $0x48] sm:$0xff] }
  0xd0   : > { %1425 = vmatprep.mubr.f32.mxu1 %v2135_v56  ;;  %v1628_v55 = vpack.c.bf16 %v849_v54, %v848_v53  ;;  %v850_v56 = vld [vmem:[#allocation8 + $0x50] sm:$0xff] }
  0xd1   : > { %v1631_v58 = vpack.c.bf16 %v851_v57, %v850_v56 }
  0xd2   : > { %1629 = vmatpush3.bf16.msra.mxu0 %v1628_v55 }
  0xd3   : > { %1426 = vmatmul.mubr.f32.gmra.mrb[18].mxu1 %v2140_v59  ;;  %1630 = vmatprep.subr.bf16.mxu0 %v1908_v43  ;;  %v852_v59 = vld [vmem:[#allocation8 + $0x60] sm:$0xff] }
  0xd4   : > { %1428 = vmatprep.mubr.f32.mxu1 %v2143_v61  ;;  %v1634_v61 = vpack.c.bf16 %v853_v60, %v852_v59 }
  0xd6   : > { %1632 = vmatpush3.bf16.msra.mxu0 %v1631_v58 }
  0xd7   : > { %1429 = vmatmul.mubr.f32.gmra.mrb[20].mxu1 %v2148_v0  ;;  %1633 = vmatprep.subr.bf16.mxu0 %v1908_v43  ;;  %v1637_v0 = vpack.c.bf16 %v855_v63, %v854_v62 }
  0xd8   : > { %1431 = vmatprep.mubr.f32.mxu1 %v2151_v2 }
  0xda   : > { %1635 = vmatpush3.bf16.msra.mxu0 %v1634_v61 }
  0xdb   : > { %1432 = vmatmul.mubr.f32.gmra.mrb[22].mxu1 %v2158_v5  ;;  %1636 = vmatprep.subr.bf16.mxu0 %v1908_v43 }
  0xde   : > { %1638 = vmatpush3.bf16.msra.mxu0 %v1637_v0 }
 0x162   : > { %v1292_v2 = vpop.f32.mrb[0].mxu1 }
 0x163   : > { %v348_v3 = vpop.f32.mrb[1].mxu1  ;;  %v393_v27 = vadd.f32 %v1292_v2, %v1128_v19 }
 0x164   : > { %v392_v20 = vadd.f32 %v1128_v19, %v348_v3 }
 0x165   : > { %v1380_v6 = vpop.f32.mrb[0].mxu0 }
 0x166   : > { %v1295_v4 = vpop.f32.mrb[2].mxu1  ;;  %v629_v7 = vpop.f32.mrb[1].mxu0 }
 0x167   : > { %v358_v5 = vpop.f32.mrb[3].mxu1  ;;  %v395_v35 = vadd.f32 %v1295_v4, %v1128_v19 }
 0x168   : > { %v394_v25 = vadd.f32 %v1128_v19, %v358_v5 }
 0x169   : > { %v1383_v10 = vpop.f32.mrb[2].mxu0 }
 0x16a   : > { %v1298_v8 = vpop.f32.mrb[4].mxu1  ;;  %v638_v11 = vpop.f32.mrb[3].mxu0 }
 0x16b   : > { %v368_v9 = vpop.f32.mrb[5].mxu1  ;;  %v397_v41 = vadd.f32 %v1298_v8, %v1128_v19 }
 0x16c   : > { %v396_v33 = vadd.f32 %v1128_v19, %v368_v9 }
 0x16d   : > { %v1386_v15 = vpop.f32.mrb[4].mxu0 }
 0x16e   : > { %v1301_v12 = vpop.f32.mrb[6].mxu1  ;;  %v648_v16 = vpop.f32.mrb[5].mxu0 }
 0x16f   : > { %v378_v13 = vpop.f32.mrb[7].mxu1 }
 0x171   : > { %v1389_v17 = vpop.f32.mrb[6].mxu0 }
 0x172   : > { %v658_v18 = vpop.f32.mrb[7].mxu0 }
 0x182   : > { %v1336_v21 = vpop.f32.mrb[8].mxu1 }
 0x183   : > { %v533_v22 = vadd.f32 %v1336_v21, %v392_v20  ;;  %v487_v23 = vpop.f32.mrb[9].mxu1 }
 0x184   : > { %v532_v24 = vadd.f32 %v1128_v19, %v487_v23 }
 0x185   : > { %v675_v26 = vadd.f32 %v638_v11, %v533_v22 }
 0x186   : > { %v1339_v28 = vpop.f32.mrb[10].mxu1  ;;  %v674_v29 = vadd.f32 %v1380_v6, %v532_v24 }
 0x187   : > { %v535_v30 = vadd.f32 %v1339_v28, %v394_v25  ;;  %v497_v31 = vpop.f32.mrb[11].mxu1 }
 0x188   : > { %v534_v32 = vadd.f32 %v497_v31, %v393_v27 }
 0x189   : > { %v677_v34 = vadd.f32 %v648_v16, %v535_v30 }
 0x18a   : > { %v1342_v36 = vpop.f32.mrb[12].mxu1  ;;  %v676_v37 = vadd.f32 %v1383_v10, %v534_v32 }
 0x18b   : > { %v537_v38 = vadd.f32 %v1342_v36, %v396_v33  ;;  %v507_v39 = vpop.f32.mrb[13].mxu1 }
 0x18c   : > { %v536_v40 = vadd.f32 %v507_v39, %v395_v35 }
 0x18d   : > { %v679_v14 = vadd.f32 %v658_v18, %v537_v38 }
 0x18e   : > { %v1345_v42 = vpop.f32.mrb[14].mxu1  ;;  %v678_v43 = vadd.f32 %v1386_v15, %v536_v40 }
 0x18f   : > { %v517_v44 = vpop.f32.mrb[15].mxu1 }
 0x190   : > { %v538_v45 = vadd.f32 %v517_v44, %v397_v41 }
 0x192   : > { %v680_v46 = vadd.f32 %v1389_v17, %v538_v45 }
 0x194   : > { %v839_v4 = vmax.f32 %v680_v46, 0.0 }
 0x1a2   : > { %v1424_v47 = vpop.f32.mrb[16].mxu1 }
 0x1a3   : > { %v771_v48 = vpop.f32.mrb[17].mxu1 }
 0x1a6   : > { %v1427_v49 = vpop.f32.mrb[18].mxu1 }
 0x1a7   : > { %v815_v50 = vadd.f32 %v1427_v49, %v675_v26  ;;  %v779_v51 = vpop.f32.mrb[19].mxu1 }
 0x1a8   : > { %v814_v52 = vadd.f32 %v779_v51, %v674_v29 }
 0x1a9   : > { %v834_v58 = vmax.f32 %v815_v50, 0.0 }
 0x1aa   : > { %v833_v53 = vmax.f32 %v814_v52, 0.0  ;;  %v1430_v54 = vpop.f32.mrb[20].mxu1 }
 0x1ab   : > { %v817_v55 = vadd.f32 %v1430_v54, %v677_v34  ;;  %v789_v56 = vpop.f32.mrb[21].mxu1 }
 0x1ac   : > { %v816_v57 = vadd.f32 %v789_v56, %v676_v37  ;;  %1467 = vmatmul.mubr.f32.vlgmr.msra.gmra.mrb[8].mxu0 %v833_v53 }
 0x1ad   : > { %1469 = vmatprep.mubr.msk.f32.mxu0 %vm1909_vm0, %v1910_v1  ;;  %v836_v0 = vmax.f32 %v817_v55, 0.0 }
 0x1ae   : > { %v1433_v59 = vpop.f32.mrb[22].mxu1  ;;  %v835_v63 = vmax.f32 %v816_v57, 0.0 }
 0x1af   : > { %v819_v60 = vadd.f32 %v1433_v59, %v679_v14  ;;  %v799_v61 = vpop.f32.mrb[23].mxu1 }
 0x1b0   : > { %v818_v62 = vadd.f32 %v799_v61, %v678_v43  ;;  %1470 = vmatmul.mubr.f32.gmra.mrb[10].mxu0 %v834_v58 }
 0x1b1   : > { %1472 = vmatprep.mubr.msk.f32.mxu0 %vm1909_vm0, %v1910_v1  ;;  %v838_v3 = vmax.f32 %v819_v60, 0.0 }
 0x1b2   : > { %v837_v2 = vmax.f32 %v818_v62, 0.0 }
 0x1b4   : > { %1473 = vmatmul.mubr.f32.gmra.mrb[12].mxu0 %v835_v63 }
 0x1b5   : > { %1475 = vmatprep.mubr.msk.f32.mxu0 %vm1909_vm0, %v1910_v1 }
 0x1b8   : > { %1476 = vmatmul.mubr.f32.gmra.mrb[14].mxu0 %v836_v0 }
 0x1b9   : > { %1478 = vmatprep.mubr.msk.f32.mxu0 %vm1909_vm0, %v1910_v1 }
 0x1bc   : > { %1479 = vmatmul.mubr.f32.gmra.mrb[16].mxu0 %v837_v2 }
 0x1bd   : > { %1481 = vmatprep.mubr.msk.f32.mxu0 %vm1909_vm0, %v1910_v1 }
 0x1c0   : > { %1482 = vmatmul.mubr.f32.gmra.mrb[18].mxu0 %v838_v3 }
 0x1c1   : > { %1484 = vmatprep.mubr.msk.f32.mxu0 %vm1909_vm0, %v1910_v1 }
 0x1c4   : > { %1485 = vmatmul.mubr.f32.gmra.mrb[20].mxu0 %v839_v4 }
 0x27f   : > { %v922_v5 = vpop.f32.mrb[8].mxu0 }
 0x280   : > { %v956_v6 = vsub.f32 0.0, %v922_v5  ;;  %v1468_v7 = vpop.f32.mrb[9].mxu0 }
 0x282   : > { %v1129_v8 = vmul.f32 -1.442695, %v956_v6 }
 0x283   : > { %v927_v9 = vpop.f32.mrb[10].mxu0 }
 0x284   : > { %1716 = vpow2.f32 %v1129_v8  ;;  %v957_v10 = vsub.f32 0.0, %v927_v9  ;;  %v1471_v11 = vpop.f32.mrb[11].mxu0 }
 0x286   : > { %v1130_v12 = vmul.f32 -1.442695, %v957_v10 }
 0x287   : > { %v932_v13 = vpop.f32.mrb[12].mxu0 }
 0x288   : > { %1718 = vpow2.f32 %v1130_v12  ;;  %v958_v15 = vsub.f32 0.0, %v932_v13  ;;  %v1474_v16 = vpop.f32.mrb[13].mxu0 }
 0x28a   : > { %v1131_v17 = vmul.f32 -1.442695, %v958_v15 }
 0x28b   : > { %v937_v18 = vpop.f32.mrb[14].mxu0 }
 0x28c   : > { %1720 = vpow2.f32 %v1131_v17  ;;  %v959_v19 = vsub.f32 0.0, %v937_v18  ;;  %v1477_v1 = vpop.f32.mrb[15].mxu0 }
 0x28e   : > { %v1717_v20 = vpop.eup %1716  ;;  %v1132_v21 = vmul.f32 -1.442695, %v959_v19 }
 0x28f   : > { %v984_v22 = vadd.f32 1.0, %v1717_v20  ;;  %v942_v23 = vpop.f32.mrb[16].mxu0 }
 0x290   : > { %1722 = vpow2.f32 %v1132_v21  ;;  %v960_v24 = vsub.f32 0.0, %v942_v23  ;;  %v1480_v25 = vpop.f32.mrb[17].mxu0 }
 0x291   : > { %1724 = vrcp.f32 %v984_v22 }
 0x292   : > { %v1719_v26 = vpop.eup %1718  ;;  %v1133_v27 = vmul.f32 -1.442695, %v960_v24 }
 0x293   : > { %v985_v28 = vadd.f32 1.0, %v1719_v26  ;;  %v947_v29 = vpop.f32.mrb[18].mxu0 }
 0x294   : > { %1726 = vpow2.f32 %v1133_v27  ;;  %v961_v30 = vsub.f32 0.0, %v947_v29  ;;  %v1483_v31 = vpop.f32.mrb[19].mxu0 }
 0x295   : > { %1728 = vrcp.f32 %v985_v28 }
 0x296   : > { %v1721_v32 = vpop.eup %1720  ;;  %v1134_v33 = vmul.f32 -1.442695, %v961_v30 }
 0x297   : > { %v986_v34 = vadd.f32 1.0, %v1721_v32  ;;  %v952_v35 = vpop.f32.mrb[20].mxu0 }
 0x298   : > { %1730 = vpow2.f32 %v1134_v33  ;;  %v962_v36 = vsub.f32 0.0, %v952_v35  ;;  %v1486_v37 = vpop.f32.mrb[21].mxu0 }
 0x299   : > { %1732 = vrcp.f32 %v986_v34 }
 0x29a   : > { %v1723_v38 = vpop.eup %1722  ;;  %v1135_v39 = vmul.f32 -1.442695, %v962_v36 }
 0x29b   : > { %v1725_v40 = vpop.eup %1724  ;;  %v987_v14 = vadd.f32 1.0, %v1723_v38 }
 0x29c   : > { %1005 = vst [vmem:[%s243_s30] sm:$0xff] %v1725_v40  ;;  %1734 = vpow2.f32 %v1135_v39 }
 0x29d   : > { %1736 = vrcp.f32 %v987_v14 }
 0x29e   : > { %v1727_v41 = vpop.eup %1726 }
 0x29f   : > { %v1729_v42 = vpop.eup %1728  ;;  %v988_v43 = vadd.f32 1.0, %v1727_v41 }
 0x2a0   : > { %1006 = vst [vmem:[%s243_s30 + $0x8] sm:$0xff] %v1729_v42 }
 0x2a1   : > { %1738 = vrcp.f32 %v988_v43 }
 0x2a2   : > { %v1731_v44 = vpop.eup %1730 }
 0x2a3   : > { %v1733_v45 = vpop.eup %1732  ;;  %v989_v46 = vadd.f32 1.0, %v1731_v44 }
 0x2a4   : > { %1007 = vst [vmem:[%s243_s30 + $0x10] sm:$0xff] %v1733_v45 }
 0x2a5   : > { %1740 = vrcp.f32 %v989_v46 }
 0x2a6   : > { %v1735_v47 = vpop.eup %1734 }
 0x2a7   : > { %v1737_v48 = vpop.eup %1736  ;;  %v990_v49 = vadd.f32 1.0, %v1735_v47 }
 0x2a8   : > { %1008 = vst [vmem:[%s243_s30 + $0x18] sm:$0xff] %v1737_v48 }
 0x2a9   : > { %1742 = vrcp.f32 %v990_v49 }
 0x2ab   : > { %v1739_v50 = vpop.eup %1738 }
 0x2ac   : > { %1009 = vst [vmem:[%s243_s30 + $0x20] sm:$0xff] %v1739_v50 }
 0x2af   : > { %v1741_v51 = vpop.eup %1740 }
 0x2b0   : > { %1010 = vst [vmem:[%s243_s30 + $0x28] sm:$0xff] %v1741_v51 }
 0x2b3   : > { %v1743_v52 = vpop.eup %1742 }
 0x2b4   : > { %1011 = vst [vmem:[%s243_s30 + $0x30] sm:$0xff] %v1743_v52 }
 0x2b5   : > { %1843 = shalt.err (!%p1840_p5)
}
 0x2b6   : > { %s1844_s13 = scalar_lea.hbm %s2204_s11, 896  ;;  %s1848_s26 = scalar_lea.hbm %s2254_s4, 1792 }
 0x2b7   : > { %p1845_p11 = scmp.ne.s32.totalorder %s2204_s11, %s1844_s13  ;;  %p1849_p6 = scmp.lt.u32.totalorder %s2204_s11, %s2254_s4 }
 0x2b8   : > { %p1850_p8 = scmp.lt.u32.totalorder %s1848_s26, %s1844_s13  ;;  %p1852_p7 = scmp.lt.u32.totalorder %s1844_s13, %s2204_s11 }
 0x2b9   : > { %p1846_p12 = pnand %p1845_p11, %p2274_p9 }
 0x2ba   : > { %p1851_p13 = por %p1850_p8, %p1849_p6 }
 0x2bb   : > { %p1847_p3 = pneg %p1846_p12 }
 0x2bc   : > { %p1853_p10 = por %p1852_p7, %p1851_p13 }
 0x2be   : > { %p1854_p1 = pnand %p1853_p10, %p1847_p3 }
 0x2c0   : > { %1857 = shalt.err (!%p1854_p1)
}
 0x2c1   : > { %s1912_s30 = smov 128   ;;  %s1913_s10 = smov 256  }
 0x2c2   : > { %s1914_s25 = smov 8  }
 0x2c3   : > { %1650 = dma.vmem_to_hbm [thread:$0]  (%p2274_p9), %s2206_s5, 896, %s2204_s11, %s1013_s12, %s1912_s30, %s1913_s10, %s1914_s25  }
 0x2c4 PF: > { %s1040_s22 = sand.u32 1, %s1888_s15   ;;  %p2275_p4 = scmp.ne.s32.totalorder %s2263_s28, 0 }
 0x2c5   : > { %p2276_p0 = scmp.ge.s32.totalorder %s1900_s18, 2  ;;  %s1041_s6 = scalar_lea.sflag [#allocation5], %s1040_s22 }
 0x2c7   : > { %p1664_p2 = pnand %p2276_p0, %p2275_p4 }
 0x2c9   : > { %1883 = dma.done.wait (!%p1664_p2), %s1041_s6, 896  }
 0x2ca   : > { %1885 = vsyncadd (!%p1664_p2), %s1041_s6, 4294966400  ;;  %p18_p5 = scmp.ge.s32.totalorder %s1965_s21, 4   ;;  %s2277_s15 = smov %s1892_s16 }
 0x2cb   : > { %s2278_s16 = smov %s1896_s17  ;;  %s2279_s17 = smov %s1977_s24 }
 0x2cc   : > { %s2280_s18 = smov %s1965_s21  ;;  %20 = sbr.rel (!%p18_p5) target bundleno = 6 (0x6), region = 93 }
 0x2d3   :  { %1046 = vsyncpa [#allocation4], 1 }
 0x2d4   :  { %1048 = vsyncpa [#allocation4 + $0x1], 1 }
 0x2d5   :  { %1049 = vsyncpa [#allocation7], 1 }
 0x2d6   :  { %1050 = vsyncpa [#allocation5], 1 }
 0x2d7   :  { %1052 = vsyncpa [#allocation5 + $0x1], 1 }

</bundles_post_ra>
